<compile_context>
chip_gen: v6e
topology: v6e:2x2x1
jax: 0.10.0
libtpu: 0.0.40
codegen_flags: <defaults>
</compile_context>

<pallas_src>
import functools

import jax
import jax.numpy as jnp
from jax.experimental import pallas as pl
from jax.experimental.pallas import tpu as pltpu


def _round_up(x, m):
    return ((x + m - 1) // m) * m


# --------------------------------------------------------------------------
# Fused kernel: chains all Linear(+activation) layers on one row tile.
#   refs layout: x_ref, w0, b0, w1, b1, ..., w{L-1}, b{L-1}, o_ref
# --------------------------------------------------------------------------
def _fused_mlp_kernel(*refs, acts):
    num_layers = len(acts)
    x_ref = refs[0]
    wb_refs = refs[1:1 + 2 * num_layers]
    o_ref = refs[1 + 2 * num_layers]

    h = x_ref[...]
    for i in range(num_layers):
        w = wb_refs[2 * i][...]          # (Din_i, Dout_i), resident in VMEM
        b = wb_refs[2 * i + 1][...]      # (1, Dout_i)
        h = jnp.dot(h, w, preferred_element_type=jnp.float32) + b
        act = acts[i]
        if act == "ReLU":
            h = jnp.maximum(h, 0.0)
        elif act == "LeakyReLU":
            h = jnp.where(h > 0, h, 0.2 * h)
        elif act == "Identity":
            pass
        else:
            raise NotImplementedError(f"activation {act!r} not implemented")
    o_ref[...] = h.astype(o_ref.dtype)


# --------------------------------------------------------------------------
# Wrapper: one pallas_call for the whole MLP.
#   x      : (N, Din0) float32
#   params : list of (W^T, b) with W^T shape (Din_i, Dout_i), b shape (Dout_i,)
#   acts   : list of activation names, one per layer
# --------------------------------------------------------------------------
def mlp_forward(x, params, acts, *, tile_n=256):
    assert len(params) == len(acts)
    N, din0 = x.shape
    num_layers = len(params)

    # ---- lane-dense final output: zero-pad last layer's Dout to a 128 multiple
    dout_last = params[-1][0].shape[1]
    dout_pad = _round_up(max(dout_last, 128), 128)
    pad_cols = dout_pad - dout_last
    padded_params = list(params[:-1])
    w_l, b_l = params[-1]
    if pad_cols:
        w_l = jnp.pad(w_l, ((0, 0), (0, pad_cols)))
        b_l = jnp.pad(b_l, (0, pad_cols))
    padded_params.append((w_l, b_l))

    # ---- row tiling: multiple of 8 sublanes, capped at tile_n, pad N up
    tn = min(tile_n, _round_up(N, 8))
    n_pad = _round_up(N, tn)
    x_p = jnp.pad(x, ((0, n_pad - N), (0, 0))) if n_pad != N else x

    # ---- specs: x tiled over rows, weights/biases fully VMEM-resident
    flat_inputs = [x_p]
    in_specs = [pl.BlockSpec((tn, din0), lambda i: (i, 0))]
    weight_bytes = 0
    for (w, b) in padded_params:
        di, do = w.shape
        flat_inputs.append(w)
        flat_inputs.append(b.reshape(1, do))
        in_specs.append(pl.BlockSpec((di, do), lambda i: (0, 0)))
        in_specs.append(pl.BlockSpec((1, do), lambda i: (0, 0)))
        weight_bytes += (di * do + do) * 4
    out_spec = pl.BlockSpec((tn, dout_pad), lambda i: (i, 0))

    flops = 2 * n_pad * sum(w.shape[0] * w.shape[1] for (w, _) in padded_params)
    bytes_accessed = n_pad * din0 * 4 + n_pad * dout_pad * 4 + weight_bytes

    kernel = functools.partial(_fused_mlp_kernel, acts=tuple(acts))
    out = pl.pallas_call(
        kernel,
        out_shape=jax.ShapeDtypeStruct((n_pad, dout_pad), jnp.float32),
        grid=(n_pad // tn,),
        in_specs=in_specs,
        out_specs=out_spec,
        compiler_params=pltpu.CompilerParams(
            dimension_semantics=("parallel",),
        ),
        cost_estimate=pl.CostEstimate(
            flops=flops, transcendentals=0, bytes_accessed=bytes_accessed),
    )(*flat_inputs)

    return out[:N, :dout_last]


# --------------------------------------------------------------------------
# Deterministic PyTorch-Linear-like init. Returns list of (W^T, b).
# --------------------------------------------------------------------------
def init_mlp_params(key, layer_sizes):
    params = []
    for i in range(len(layer_sizes) - 1):
        fan_in, fan_out = layer_sizes[i], layer_sizes[i + 1]
        key, kw, kb = jax.random.split(key, 3)
        bound = 1.0 / (fan_in ** 0.5)
        w = jax.random.uniform(kw, (fan_out, fan_in), jnp.float32, -bound, bound)
        b = jax.random.uniform(kb, (fan_out,), jnp.float32, -bound, bound)
        params.append((w.T, b))  # store transposed: (Din, Dout)
    return params


# --------------------------------------------------------------------------
# Pure-JAX reference for verification
# --------------------------------------------------------------------------
def ref_mlp(x, params, acts):
    for (w_t, b), a in zip(params, acts):
        x = jnp.dot(x, w_t, preferred_element_type=jnp.float32) + b
        if a == "ReLU":
            x = jnp.maximum(x, 0.0)
        elif a == "LeakyReLU":
            x = jnp.where(x > 0, x, 0.2 * x)
        elif a == "Identity":
            pass
    return x


if __name__ == "__main__":
    # Small config consistent with the module's usage in scene_graph.py:
    #   batch N = 8 rows, layer_sizes = [80, 64, 32], activations = [ReLU, ReLU]
    N = 8
    layer_sizes = [80, 64, 32]
    acts = ["ReLU", "ReLU"]

    # A second MLP exercising Identity / LeakyReLU activations.
    layer_sizes2 = [32, 32, 32]
    acts2 = ["LeakyReLU", "Identity"]

    key = jax.random.PRNGKey(0)
    kx, kx2, kp1, kp2 = jax.random.split(key, 4)

    x = jax.random.normal(kx, (N, layer_sizes[0]), jnp.float32)
    x2 = jax.random.normal(kx2, (N, layer_sizes2[0]), jnp.float32)

    params1 = init_mlp_params(kp1, layer_sizes)
    params2 = init_mlp_params(kp2, layer_sizes2)

    out1 = mlp_forward(x, params1, acts)
    out2 = mlp_forward(x2, params2, acts2)
    jax.block_until_ready((out1, out2))

    ref1 = ref_mlp(x, params1, acts)
    ref2 = ref_mlp(x2, params2, acts2)

    assert out1.shape == (N, layer_sizes[-1]), out1.shape
    assert out2.shape == (N, layer_sizes2[-1]), out2.shape
    assert jnp.allclose(out1, ref1, atol=1e-4, rtol=1e-4), \
        float(jnp.max(jnp.abs(out1 - ref1)))
    assert jnp.allclose(out2, ref2, atol=1e-4, rtol=1e-4), \
        float(jnp.max(jnp.abs(out2 - ref2)))

    print("KERNEL_OK")
</pallas_src>

<mosaic_0001>
module attributes {stable_mosaic.version = 11 : i64} {
  func.func @_fused_mlp_kernel(%arg0: i32, %arg1: memref<8x80xf32, #tpu.memory_space<vmem>>, %arg2: memref<80x64xf32, #tpu.memory_space<vmem>>, %arg3: memref<1x64xf32, #tpu.memory_space<vmem>>, %arg4: memref<64x128xf32, #tpu.memory_space<vmem>>, %arg5: memref<1x128xf32, #tpu.memory_space<vmem>>, %arg6: memref<8x128xf32, #tpu.memory_space<vmem>>) attributes {dimension_semantics = [#tpu.dimension_semantics<parallel>], iteration_bounds = array<i64: 1>, scalar_prefetch = 0 : i64, scratch_operands = 0 : i64, tpu.core_type = #tpu.core_type<tc>, window_params = [{transform_indices = @transform_0, window_bounds = array<i64: 8, 80>}, {pipeline_mode = #tpu.pipeline_mode<synchronous>, transform_indices = @transform_1, window_bounds = array<i64: 80, 64>}, {pipeline_mode = #tpu.pipeline_mode<synchronous>, transform_indices = @transform_2, window_bounds = array<i64: 1, 64>}, {pipeline_mode = #tpu.pipeline_mode<synchronous>, transform_indices = @transform_3, window_bounds = array<i64: 64, 128>}, {pipeline_mode = #tpu.pipeline_mode<synchronous>, transform_indices = @transform_4, window_bounds = array<i64: 1, 128>}, {transform_indices = @transform_5, window_bounds = array<i64: 8, 128>}]} {
    %c0 = arith.constant 0 : index
    %c0_0 = arith.constant 0 : index
    %0 = vector.load %arg1[%c0, %c0_0] : memref<8x80xf32, #tpu.memory_space<vmem>>, vector<8x80xf32>
    %c0_1 = arith.constant 0 : index
    %c0_2 = arith.constant 0 : index
    %1 = vector.load %arg2[%c0_1, %c0_2] : memref<80x64xf32, #tpu.memory_space<vmem>>, vector<80x64xf32>
    %c0_3 = arith.constant 0 : index
    %c0_4 = arith.constant 0 : index
    %2 = vector.load %arg3[%c0_3, %c0_4] : memref<1x64xf32, #tpu.memory_space<vmem>>, vector<1x64xf32>
    %cst = arith.constant dense<0.000000e+00> : vector<8x64xf32>
    %3 = tpu.matmul %0, %1, %cst {dimension_numbers = #tpu.dot_dimension_numbers<[1], [0], [0], [1], [0, 0, 1, 1], [], []>} : vector<8x80xf32>, vector<80x64xf32>, vector<8x64xf32> -> vector<8x64xf32>
    %4 = vector.broadcast %2 : vector<1x64xf32> to vector<8x64xf32>
    %5 = arith.addf %3, %4 : vector<8x64xf32>
    %cst_5 = arith.constant 0.000000e+00 : f32
    %6 = vector.broadcast %cst_5 : f32 to vector<8x64xf32>
    %7 = arith.maximumf %5, %6 : vector<8x64xf32>
    %c0_6 = arith.constant 0 : index
    %c0_7 = arith.constant 0 : index
    %8 = vector.load %arg4[%c0_6, %c0_7] : memref<64x128xf32, #tpu.memory_space<vmem>>, vector<64x128xf32>
    %c0_8 = arith.constant 0 : index
    %c0_9 = arith.constant 0 : index
    %9 = vector.load %arg5[%c0_8, %c0_9] : memref<1x128xf32, #tpu.memory_space<vmem>>, vector<1x128xf32>
    %cst_10 = arith.constant dense<0.000000e+00> : vector<8x128xf32>
    %10 = tpu.matmul %7, %8, %cst_10 {dimension_numbers = #tpu.dot_dimension_numbers<[1], [0], [0], [1], [0, 0, 1, 1], [], []>} : vector<8x64xf32>, vector<64x128xf32>, vector<8x128xf32> -> vector<8x128xf32>
    %11 = vector.broadcast %9 : vector<1x128xf32> to vector<8x128xf32>
    %12 = arith.addf %10, %11 : vector<8x128xf32>
    %cst_11 = arith.constant 0.000000e+00 : f32
    %13 = vector.broadcast %cst_11 : f32 to vector<8x128xf32>
    %14 = arith.maximumf %12, %13 : vector<8x128xf32>
    %c0_12 = arith.constant 0 : index
    %c0_13 = arith.constant 0 : index
    %15 = vector.load %arg6[%c0_12, %c0_13] : memref<8x128xf32, #tpu.memory_space<vmem>>, vector<8x128xf32>
    tpu.vector_store %arg6[%c0_12, %c0_13], %14 {strides = array<i32>} : memref<8x128xf32, #tpu.memory_space<vmem>>, vector<8x128xf32>,
    return
  }
  func.func @transform_0(%arg0: i32) -> (i32, i32) {
    %c0_i32 = arith.constant 0 : i32
    %c0_i32_0 = arith.constant 0 : i32
    return %arg0, %c0_i32 : i32, i32
  }
  func.func @transform_1(%arg0: i32) -> (i32, i32) {
    %c0_i32 = arith.constant 0 : i32
    %c0_i32_0 = arith.constant 0 : i32
    %c0_i32_1 = arith.constant 0 : i32
    return %c0_i32, %c0_i32_0 : i32, i32
  }
  func.func @transform_2(%arg0: i32) -> (i32, i32) {
    %c0_i32 = arith.constant 0 : i32
    %c0_i32_0 = arith.constant 0 : i32
    %c0_i32_1 = arith.constant 0 : i32
    return %c0_i32, %c0_i32_0 : i32, i32
  }
  func.func @transform_3(%arg0: i32) -> (i32, i32) {
    %c0_i32 = arith.constant 0 : i32
    %c0_i32_0 = arith.constant 0 : i32
    %c0_i32_1 = arith.constant 0 : i32
    return %c0_i32, %c0_i32_0 : i32, i32
  }
  func.func @transform_4(%arg0: i32) -> (i32, i32) {
    %c0_i32 = arith.constant 0 : i32
    %c0_i32_0 = arith.constant 0 : i32
    %c0_i32_1 = arith.constant 0 : i32
    return %c0_i32, %c0_i32_0 : i32, i32
  }
  func.func @transform_5(%arg0: i32) -> (i32, i32) {
    %c0_i32 = arith.constant 0 : i32
    %c0_i32_0 = arith.constant 0 : i32
    return %arg0, %c0_i32 : i32, i32
  }
}

</mosaic_0001>

<bundles_post_ra>
// kernel: tpu_custom_call.1
= control target key start
LH: loop header
LB: loop body
LE: loop exit
PB: predicated region body
PF: predicated region fallthrough
CT: control target
= control target key end

     0   :  { %v310_v1 = vmov 0.0   ;;  %vm311_vm0 = vmmov 0   ;;  %s409_s0 = inlined_call_operand.vmem [shape: f32[8,80], index: 0, kind: input, shape index: {}]   ;;  %s410_s1 = inlined_call_operand.vmem [shape: f32[80,64], index: 1, kind: input, shape index: {}]   ;;  %s411_s2 = inlined_call_operand.vmem [shape: f32[1,64], index: 2, kind: input, shape index: {}]   ;;  %s412_s3 = inlined_call_operand.vmem [shape: f32[64,128], index: 3, kind: input, shape index: {}]   ;;  %s413_s4 = inlined_call_operand.vmem [shape: f32[1,128], index: 4, kind: input, shape index: {}]   ;;  %s414_s5 = inlined_call_operand.hbm [shape: f32[8,128], index: 5, kind: output, shape index: {}]  }
   0x1   :  { %v31_v0 = vld [vmem:[%s410_s1 + $0x48] sm:$0xff]  ;;  %243 = vmatprep.subr.mxu0 %v310_v1  ;;  %v30_v2 = vld [vmem:[%s410_s1 + $0x40] sm:$0xff]  ;;  %263 = vmatprep.mubr.msk.f32.mxu0 %vm311_vm0, %v310_v1  ;;  %v29_v3 = vld [vmem:[%s410_s1 + $0x38] sm:$0xff] }
   0x2   :  { %244 = vmatpush3.msra.mxu0 %v31_v0  ;;  %266 = vmatprep.subr.mxu1 %v310_v1  ;;  %v121_v4 = vld [vmem:[%s412_s3 + $0x38] sm:$0xff]  ;;  %v120_v5 = vld [vmem:[%s412_s3 + $0x30] sm:$0xff]  ;;  %v119_v7 = vld [vmem:[%s412_s3 + $0x28] sm:$0xff] }
   0x3   :  { %245 = vmatprep.subr.mxu0 %v310_v1  ;;  %282 = vmatprep.mubr.msk.f32.mxu1 %vm311_vm0, %v310_v1  ;;  %v28_v6 = vld [vmem:[%s410_s1 + $0x30] sm:$0xff] }
   0x4   :  { %246 = vmatpush3.msra.mxu0 %v30_v2  ;;  %267 = vmatpush3.msra.mxu1 %v121_v4 }
   0x5   :  { %247 = vmatprep.subr.mxu0 %v310_v1  ;;  %268 = vmatprep.subr.mxu1 %v310_v1 }
   0x6   :  { %10 = vsyncpa [#allocation3], 0  ;;  %248 = vmatpush3.msra.mxu0 %v29_v3  ;;  %269 = vmatpush3.msra.mxu1 %v120_v5  ;;  %v27_v8 = vld [vmem:[%s410_s1 + $0x28] sm:$0xff]  ;;  %v118_v9 = vld [vmem:[%s412_s3 + $0x20] sm:$0xff]  ;;  %vm39_vm1 = vcmask 654336   ;;  %vm129_vm2 = vcmask 523264  }
   0x7   :  { %249 = vmatprep.subr.mxu0 %v310_v1  ;;  %270 = vmatprep.subr.mxu1 %v310_v1  ;;  %v26_v10 = vld [vmem:[%s410_s1 + $0x20] sm:$0xff]  ;;  %v117_v11 = vld [vmem:[%s412_s3 + $0x18] sm:$0xff]  ;;  %v24_v13 = vld [vmem:[%s410_s1 + $0x10] sm:$0xff]  ;;  %s312_s8 = smov [#allocation2]  }
   0x8   :  { %250 = vmatpush3.msra.mxu0 %v28_v6  ;;  %271 = vmatpush3.msra.mxu1 %v119_v7  ;;  %v25_v12 = vld [vmem:[%s410_s1 + $0x18] sm:$0xff]  ;;  %v23_v14 = vld [vmem:[%s410_s1 + $0x8] sm:$0xff]  ;;  %v22_v15 = vld [vmem:[%s410_s1] sm:$0xff]  ;;  %s211_s9 = sshll.u32 %s312_s8, 4  ;;  %s212_s9 = int_to_ptr.vmem [resolvable:$true] %s211_s9 }
   0x9   :  { %251 = vmatprep.subr.mxu0 %v310_v1  ;;  %272 = vmatprep.subr.mxu1 %v310_v1  ;;  %v21_v16 = vld [vmem:[%s409_s0] sm:$0xff]  ;;  %v116_v17 = vld [vmem:[%s412_s3 + $0x10] sm:$0xff]  ;;  %v115_v18 = vld [vmem:[%s412_s3 + $0x8] sm:$0xff]  ;;  %p293_p1 = scmp.lt.s32.totalorder %s212_s9, %s212_s9 }
   0xa   :  { %252 = vmatpush3.msra.mxu0 %v27_v8  ;;  %273 = vmatpush3.msra.mxu1 %v118_v9  ;;  %v114_v19 = vld [vmem:[%s412_s3] sm:$0xff]  ;;  %s288_s3 = scalar_lea.vmem %s212_s9, 128 }
   0xb   :  { %253 = vmatprep.subr.mxu0 %v310_v1  ;;  %274 = vmatprep.subr.mxu1 %v310_v1  ;;  %v219_v20 = vld [vmem:[%s411_s2] ss:$0 sm:$0xff]  ;;  %p289_p0 = scmp.ne.s32.totalorder %s212_s9, %s288_s3  ;;  %p294_p2 = scmp.lt.s32.totalorder %s288_s3, %s288_s3 }
   0xc   :  { %254 = vmatpush3.msra.mxu0 %v26_v10  ;;  %275 = vmatpush3.msra.mxu1 %v117_v11  ;;  %v221_v25 = vld [vmem:[%s413_s4] ss:$0 sm:$0xff] }
   0xd   :  { %255 = vmatprep.subr.mxu0 %v310_v1  ;;  %276 = vmatprep.subr.mxu1 %v310_v1  ;;  %p295_p3 = por %p294_p2, %p293_p1 }
   0xe   :  { %256 = vmatpush3.msra.mxu0 %v25_v12  ;;  %277 = vmatpush3.msra.mxu1 %v116_v17 }
   0xf   :  { %257 = vmatprep.subr.mxu0 %v310_v1  ;;  %278 = vmatprep.subr.mxu1 %v310_v1  ;;  %p296_p4 = pnand %p295_p3, %p289_p0 }
  0x10   :  { %258 = vmatpush3.msra.mxu0 %v24_v13  ;;  %279 = vmatpush3.msra.mxu1 %v115_v18 }
  0x11   :  { %259 = vmatprep.subr.mxu0 %v310_v1  ;;  %280 = vmatprep.subr.mxu1 %v310_v1 }
  0x12   :  { %260 = vmatpush3.msra.mxu0 %v23_v14  ;;  %281 = vmatpush3.msra.mxu1 %v114_v19 }
  0x13   :  { %261 = vmatprep.subr.mxu0 %v310_v1 }
  0x14   :  { %262 = vmatpush3.msra.mxu0 %v22_v15 }
  0x15   :  { %264 = vmatmul.mubr.msk.f32.vlgmr.msra.gmra.mxu0 %vm39_vm1, %v21_v16 }
  0xd5   :  { %v109_v21 = vpop.f32.mrf.mxu0 }
  0xd6   :  { %v110_v22 = vadd.f32 %v219_v20, %v109_v21 }
  0xd7   :  { %v265_v23 = vpop.f32.mrf.mxu0 }
  0xd8   :  { %v113_v24 = vmax.f32 %v110_v22, 0.0 }
  0xda   :  { %283 = vmatmul.mubr.msk.f32.vlgmr.msra.gmra.mxu1 %vm129_vm2, %v113_v24 }
 0x19a   :  { %v199_v26 = vpop.f32.mrf.mxu1 }
 0x19b   :  { %v200_v27 = vadd.f32 %v221_v25, %v199_v26 }
 0x19c   :  { %v284_v28 = vpop.f32.mrf.mxu1 }
 0x19d   :  { %v203_v29 = vmax.f32 %v200_v27, 0.0 }
 0x19f   :  { %204 = vst [vmem:[#allocation2] sm:$0xff] %v203_v29 }
 0x1a0   :  { %299 = shalt.err (!%p296_p4)
}
 0x1a1   :  { %214 = dma.vmem_to_hbm [thread:$0]  %s212_s9, 128, %s414_s5, [#allocation3]  }
 0x1a2   :  { %308 = dma.done.wait [#allocation3], 128  }
 0x1a3   :  { %309 = vsyncadd [#allocation3], 4294967168 }
 0x1a4   :  { %218 = vsyncpa [#allocation3], 1 }

</bundles_post_ra>
